<compile_context>
chip_gen: v7x
topology: tpu7x:2x2x1
jax: 0.10.0
libtpu: 0.0.40
codegen_flags: <defaults>
</compile_context>

<pallas_src>
import jax
import jax.numpy as jnp
from jax.experimental import pallas as pl
from jax.experimental.pallas import tpu as pltpu


# ----------------------------------------------------------------------------
# Pass 1: fused channel projection  proj = Wcat @ v + bcat   (per v column tile)
# ----------------------------------------------------------------------------
def _proj_kernel(v_ref, wcat_ref, bcat_ref, proj_ref):
    # v_ref: (1, D, TN); wcat: (3*inter, D); bcat: (3*inter, 1)
    proj_ref[0] = (
        jnp.dot(wcat_ref[...], v_ref[0], preferred_element_type=jnp.float32)
        + bcat_ref[...]
    )


# ----------------------------------------------------------------------------
# Pass 2: tiled attention + output conv (BN folded) + residual
# ----------------------------------------------------------------------------
def _attn_kernel(th_ref, ph_ref, g_ref, v_ref, ww_ref, bw_ref,
                 vstar_ref, r_ref, yacc_ref):
    j = pl.program_id(2)

    th = th_ref[0]   # (inter, TQ)  -- theta, already scaled by 1/N
    ph = ph_ref[0]   # (inter, TK)  -- phi

    # R tile = theta_q^T @ phi_k : contract the channel axis directly
    # (MXU consumes the "transposed" LHS natively; no XLU transpose).
    r = jax.lax.dot_general(
        th, ph, (((0,), (0,)), ((), ())),
        preferred_element_type=jnp.float32)          # (TQ, TK)
    r_ref[0] = r

    @pl.when(j == 0)
    def _():
        yacc_ref[...] = jnp.zeros_like(yacc_ref)

    # y_cn(c, q) += sum_k g(c, k) * R(q, k)  : contract the k axis of both.
    yacc_ref[...] += jax.lax.dot_general(
        g_ref[0], r, (((1,), (1,)), ((), ())),
        preferred_element_type=jnp.float32)          # (inter, TQ)

    @pl.when(j == pl.num_programs(2) - 1)
    def _():
        # Output 1x1 conv with BatchNorm folded into (ww_eff, bw_eff).
        wy = jnp.dot(ww_ref[...], yacc_ref[...],
                     preferred_element_type=jnp.float32) + bw_ref[...]
        vstar_ref[0] = wy + v_ref[0]


def _pick_tile(n):
    """Largest lane-friendly tile (<=512) that divides N; else full N."""
    for t in (512, 256, 128):
        if n % t == 0:
            return t
    return n


def rs_gcn_forward(v, params):
    """v: (B, D, N) float32. Returns (v_star (B,D,N), R_div_C (B,N,N))."""
    B, D, N = v.shape
    inter = params["wg"].shape[0]
    tile = _pick_tile(N)
    nt = N // tile

    inv_n = jnp.float32(1.0 / N)

    # Fuse the three 1x1-conv projections into one weight; fold the 1/N
    # attention scale into the theta rows (trace-time transform).
    wcat = jnp.concatenate(
        [params["wth"] * inv_n, params["wph"], params["wg"]], axis=0)          # (3I, D)
    bcat = jnp.concatenate(
        [params["bth"] * inv_n, params["bph"], params["bg"]], axis=0
    ).reshape(-1, 1)                                                            # (3I, 1)

    # Fold inference-form BatchNorm into the output conv (trace-time; re-fold
    # if BN stats / gamma / beta change between calls).
    bn_scale = params["bn_gamma"] * jax.lax.rsqrt(params["bn_var"] + 1e-5)      # (D,)
    ww_eff = params["ww"] * bn_scale[:, None]                                   # (D, I)
    bw_eff = (bn_scale * (params["bw"] - params["bn_mean"])
              + params["bn_beta"]).reshape(-1, 1)                               # (D, 1)

    # ---------------- Pass 1: projection ----------------
    proj = pl.pallas_call(
        _proj_kernel,
        out_shape=jax.ShapeDtypeStruct((B, 3 * inter, N), jnp.float32),
        grid_spec=pltpu.PrefetchScalarGridSpec(
            num_scalar_prefetch=0,
            grid=(B, nt),
            in_specs=[
                pl.BlockSpec((1, D, tile), lambda b, i: (b, 0, i)),
                pl.BlockSpec((3 * inter, D), lambda b, i: (0, 0)),
                pl.BlockSpec((3 * inter, 1), lambda b, i: (0, 0)),
            ],
            out_specs=pl.BlockSpec((1, 3 * inter, tile), lambda b, i: (b, 0, i)),
        ),
        compiler_params=pltpu.CompilerParams(
            dimension_semantics=("parallel", "parallel")),
    )(v, wcat, bcat)

    # ---------------- Pass 2: tiled attention + output ----------------
    # proj rows: [0:I] = theta/N, [I:2I] = phi, [2I:3I] = g  -> channel blocks
    # 0 / 1 / 2 of a (1, inter, tile) BlockSpec.
    out_shape = [
        jax.ShapeDtypeStruct((B, D, N), jnp.float32),   # v_star
        jax.ShapeDtypeStruct((B, N, N), jnp.float32),   # R_div_C
    ]
    in_specs = [
        pl.BlockSpec((1, inter, tile), lambda b, i, j: (b, 0, i)),   # theta (q tile)
        pl.BlockSpec((1, inter, tile), lambda b, i, j: (b, 1, j)),   # phi   (k tile)
        pl.BlockSpec((1, inter, tile), lambda b, i, j: (b, 2, j)),   # g     (k tile)
        pl.BlockSpec((1, D, tile),     lambda b, i, j: (b, 0, i)),   # v     (residual)
        pl.BlockSpec((D, inter),       lambda b, i, j: (0, 0)),      # Ww_eff
        pl.BlockSpec((D, 1),           lambda b, i, j: (0, 0)),      # bw_eff
    ]
    out_specs = [
        pl.BlockSpec((1, D, tile),     lambda b, i, j: (b, 0, i)),   # v_star (resident over j)
        pl.BlockSpec((1, tile, tile),  lambda b, i, j: (b, i, j)),   # R_div_C tile
    ]

    v_star, r_div_c = pl.pallas_call(
        _attn_kernel,
        out_shape=out_shape,
        grid_spec=pltpu.PrefetchScalarGridSpec(
            num_scalar_prefetch=0,
            grid=(B, nt, nt),
            in_specs=in_specs,
            out_specs=out_specs,
            scratch_shapes=[pltpu.VMEM((inter, tile), jnp.float32)],
        ),
        compiler_params=pltpu.CompilerParams(
            dimension_semantics=("parallel", "parallel", "arbitrary")),
    )(proj, proj, proj, v, ww_eff, bw_eff)

    return v_star, r_div_c


# ----------------------------------------------------------------------------
# Pure-JAX reference mirroring the PyTorch forward (explicit BN, explicit /N).
# ----------------------------------------------------------------------------
def rs_gcn_reference(v, p):
    conv1x1 = lambda w, b, x: jnp.einsum("oc,bcn->bon", w, x) + b[None, :, None]
    g_v  = jnp.transpose(conv1x1(p["wg"],  p["bg"],  v), (0, 2, 1))   # (B,N,I)
    th_v = jnp.transpose(conv1x1(p["wth"], p["bth"], v), (0, 2, 1))   # (B,N,I)
    ph_v = conv1x1(p["wph"], p["bph"], v)                             # (B,I,N)
    R = jnp.matmul(th_v, ph_v)                                        # (B,N,N)
    R_div_C = R / R.shape[-1]
    y = jnp.matmul(R_div_C, g_v)                                      # (B,N,I)
    y = jnp.transpose(y, (0, 2, 1))                                   # (B,I,N)
    wy = conv1x1(p["ww"], p["bw"], y)                                 # (B,D,N)
    inv_std = 1.0 / jnp.sqrt(p["bn_var"] + 1e-5)
    wy = (p["bn_gamma"] * (wy.transpose(0, 2, 1) - p["bn_mean"]) * inv_std
          + p["bn_beta"]).transpose(0, 2, 1)
    return wy + v, R_div_C


def make_params(key, in_channels, inter_channels, random_bn=False):
    ks = jax.random.split(key, 12)
    rnd = lambda k, shape: (0.1 * jax.random.normal(k, shape)).astype(jnp.float32)
    p = {
        "wg":  rnd(ks[0], (inter_channels, in_channels)),
        "bg":  rnd(ks[1], (inter_channels,)),
        "wth": rnd(ks[2], (inter_channels, in_channels)),
        "bth": rnd(ks[3], (inter_channels,)),
        "wph": rnd(ks[4], (inter_channels, in_channels)),
        "bph": rnd(ks[5], (inter_channels,)),
        "ww":  rnd(ks[6], (in_channels, inter_channels)),
        "bw":  rnd(ks[7], (in_channels,)),
        # BatchNorm1d: gamma/beta zero-initialized per the module __init__,
        # running stats at their PyTorch defaults.
        "bn_gamma": jnp.zeros((in_channels,), jnp.float32),
        "bn_beta":  jnp.zeros((in_channels,), jnp.float32),
        "bn_mean":  jnp.zeros((in_channels,), jnp.float32),
        "bn_var":   jnp.ones((in_channels,), jnp.float32),
    }
    if random_bn:  # exercise the folded-BN path with nontrivial stats
        p["bn_gamma"] = rnd(ks[8], (in_channels,))
        p["bn_beta"]  = rnd(ks[9], (in_channels,))
        p["bn_mean"]  = rnd(ks[10], (in_channels,))
        p["bn_var"]   = jnp.abs(rnd(ks[11], (in_channels,))) + 0.5
    return p


def _check(v, params, atol=1e-4, rtol=1e-4):
    v_star, r_div_c = jax.block_until_ready(rs_gcn_forward(v, params))
    v_star_ref, r_ref = rs_gcn_reference(v, params)
    assert jnp.allclose(v_star, v_star_ref, atol=atol, rtol=rtol)
    assert jnp.allclose(r_div_c, r_ref, atol=atol, rtol=rtol)


if __name__ == "__main__":
    key = jax.random.PRNGKey(0)
    k1, k2, k3, k4 = jax.random.split(key, 4)

    # Small demo shapes consistent with the module (module-init params).
    B, D, N, INTER = 2, 4, 16, 8
    v = jax.random.normal(k1, (B, D, N), dtype=jnp.float32)
    _check(v, make_params(k2, D, INTER))

    # Same shapes with non-trivial BatchNorm stats (validates the BN fold).
    _check(v, make_params(k2, D, INTER, random_bn=True))

    # Larger sequence exercising the multi-tile (q, k) accumulation path.
    B2, D2, N2, INTER2 = 2, 8, 384, 16     # tile=128 -> 3 k-tiles per q-tile
    v2 = jax.random.normal(k3, (B2, D2, N2), dtype=jnp.float32)
    _check(v2, make_params(k4, D2, INTER2, random_bn=True))

    print("KERNEL_OK")
</pallas_src>

<mosaic_0001>
module attributes {stable_mosaic.version = 11 : i64} {
  func.func @_proj_kernel(%arg0: i32, %arg1: i32, %arg2: memref<1x4x16xf32, #tpu.memory_space<vmem>>, %arg3: memref<24x4xf32, #tpu.memory_space<vmem>>, %arg4: memref<24x1xf32, #tpu.memory_space<vmem>>, %arg5: memref<1x24x16xf32, #tpu.memory_space<vmem>>) attributes {dimension_semantics = [#tpu.dimension_semantics<parallel>, #tpu.dimension_semantics<parallel>], iteration_bounds = array<i64: 2, 1>, scalar_prefetch = 0 : i64, scratch_operands = 0 : i64, tpu.core_type = #tpu.core_type<tc>, window_params = [{transform_indices = @transform_0, window_bounds = array<i64: 1, 4, 16>}, {pipeline_mode = #tpu.pipeline_mode<synchronous>, transform_indices = @transform_1, window_bounds = array<i64: 24, 4>}, {pipeline_mode = #tpu.pipeline_mode<synchronous>, transform_indices = @transform_2, window_bounds = array<i64: 24, 1>}, {transform_indices = @transform_3, window_bounds = array<i64: 1, 24, 16>}]} {
    %c0 = arith.constant 0 : index
    %c0_0 = arith.constant 0 : index
    %0 = vector.load %arg3[%c0, %c0_0] : memref<24x4xf32, #tpu.memory_space<vmem>>, vector<24x4xf32>
    %c0_1 = arith.constant 0 : index
    %c0_2 = arith.constant 0 : index
    %c0_3 = arith.constant 0 : index
    %1 = vector.load %arg2[%c0_1, %c0_2, %c0_3] : memref<1x4x16xf32, #tpu.memory_space<vmem>>, vector<1x4x16xf32>
    %2 = vector.shape_cast %1 : vector<1x4x16xf32> to vector<4x16xf32>
    %cst = arith.constant dense<0.000000e+00> : vector<24x16xf32>
    %3 = tpu.matmul %0, %2, %cst {dimension_numbers = #tpu.dot_dimension_numbers<[1], [0], [0], [1], [0, 0, 1, 1], [], []>} : vector<24x4xf32>, vector<4x16xf32>, vector<24x16xf32> -> vector<24x16xf32>
    %c0_4 = arith.constant 0 : index
    %c0_5 = arith.constant 0 : index
    %4 = vector.load %arg4[%c0_4, %c0_5] : memref<24x1xf32, #tpu.memory_space<vmem>>, vector<24x1xf32>
    %5 = vector.broadcast %4 : vector<24x1xf32> to vector<24x16xf32>
    %6 = arith.addf %3, %5 : vector<24x16xf32>
    %c0_6 = arith.constant 0 : index
    %c0_7 = arith.constant 0 : index
    %c0_8 = arith.constant 0 : index
    %7 = vector.load %arg5[%c0_6, %c0_7, %c0_8] : memref<1x24x16xf32, #tpu.memory_space<vmem>>, vector<1x24x16xf32>
    %8 = vector.shape_cast %7 : vector<1x24x16xf32> to vector<24x16xf32>
    %9 = vector.shape_cast %6 : vector<24x16xf32> to vector<1x24x16xf32>
    tpu.vector_store %arg5[%c0_6, %c0_7, %c0_8], %9 {strides = array<i32>} : memref<1x24x16xf32, #tpu.memory_space<vmem>>, vector<1x24x16xf32>,
    return
  }
  func.func @transform_0(%arg0: i32, %arg1: i32) -> (i32, i32, i32) {
    %c0_i32 = arith.constant 0 : i32
    %c0_i32_0 = arith.constant 0 : i32
    return %arg0, %c0_i32, %arg1 : i32, i32, i32
  }
  func.func @transform_1(%arg0: i32, %arg1: i32) -> (i32, i32) {
    %c0_i32 = arith.constant 0 : i32
    %c0_i32_0 = arith.constant 0 : i32
    %c0_i32_1 = arith.constant 0 : i32
    return %c0_i32, %c0_i32_0 : i32, i32
  }
  func.func @transform_2(%arg0: i32, %arg1: i32) -> (i32, i32) {
    %c0_i32 = arith.constant 0 : i32
    %c0_i32_0 = arith.constant 0 : i32
    %c0_i32_1 = arith.constant 0 : i32
    return %c0_i32, %c0_i32_0 : i32, i32
  }
  func.func @transform_3(%arg0: i32, %arg1: i32) -> (i32, i32, i32) {
    %c0_i32 = arith.constant 0 : i32
    %c0_i32_0 = arith.constant 0 : i32
    return %arg0, %c0_i32, %arg1 : i32, i32, i32
  }
}

</mosaic_0001>

<bundles_post_ra>
// kernel: tpu_custom_call.1
= control target key start
LH: loop header
LB: loop body
LE: loop exit
PB: predicated region body
PF: predicated region fallthrough
CT: control target
= control target key end

     0   :  { %s506_s12 = smov 0   ;;  %s508_s13 = smov 0   ;;  %s564_s0 = inlined_call_operand.vmem [shape: f32[2,4,16], index: 0, kind: input, shape index: {}]   ;;  %s565_s1 = inlined_call_operand.vmem [shape: f32[24,4], index: 1, kind: input, shape index: {}]   ;;  %s566_s2 = inlined_call_operand.vmem [shape: f32[24,1], index: 2, kind: input, shape index: {}]   ;;  %s567_s3 = inlined_call_operand.vmem [shape: f32[2,24,16], index: 3, kind: output, shape index: {}]  }
   0x1   :  { %s510_s14 = smov 0  }
   0x2 LB: > { %s25_s15 = sadd.s32 1, %s477_s13  ;;  %p403_p0 = scmp.ge.s32.totalorder %s481_s14, 1  ;;  %s481_s14 = sphi %s510_s14, %s13_s14   ;;  %s477_s13 = sphi %s508_s13, %s569_s13   ;;  %s473_s12 = sphi %s506_s12, %s568_s12  }
   0x3   : > { %p27_p1 = scmp.ge.s32.totalorder %s25_s15, 2  ;;  %p155_p2 = scmp.lt.s32.totalorder %s481_s14, 3 }
   0x5   : > { %s571_s15 = smov (%p27_p1, %s25_s15), 0  ;;  %p156_p3 = pnand %p403_p0, %p155_p2 }
   0x6   : > { %p184_p4 = scmp.lt.s32.totalorder (!%p156_p3), %s473_s12, 1  ;;  %v483_v0 = vmov (!%p156_p3), 0.0   ;;  %v203_v1 = vld [vmem:[%s566_s2] sm:$0xff] (!%p156_p3)  ;;  %vm484_vm0 = vmmov (!%p156_p3), 0   ;;  %v205_v2 = vld [vmem:[%s566_s2 + $0x10] sm:$0xff] (!%p156_p3)  ;;  %v485_v3 = vmov (!%p156_p3), 0  }
   0x7   : > { %159 = sbr.rel (%p156_p3) target bundleno = 238 (0xee), region = 32  ;;  %416 = vmatprep.subr.mxu0 (!%p156_p3), %v483_v0  ;;  %427 = vmatprep.subr.mxu1 (!%p156_p3), %v483_v0  ;;  %vm231_vm1 = vcmask (!%p156_p3), 1043456   ;;  %v199_v4 = vld [vmem:[%s565_s1] sm:$0xff] (!%p156_p3)  ;;  %vm221_vm2 = vcmask (!%p156_p3), 31744   ;;  %v200_v5 = vld [vmem:[%s565_s1 + $0x8] sm:$0xff] (!%p156_p3)  ;;  %v201_v8 = vld [vmem:[%s565_s1 + $0x10] sm:$0xff] (!%p156_p3) }
   0x8   : > { %418 = vmatprep.mubr.msk.f32.mxu0 (!%p156_p3), %vm484_vm0, %v483_v0  ;;  %421 = vmatprep.mubr.msk.f32.mxu1 (!%p156_p3), %vm484_vm0, %v483_v0  ;;  %v204_v7 = vld [vmem:[%s566_s2 + $0x8] sm:$0xff] (!%p156_p3)  ;;  %vm315_vm3 = vcmask (!%p156_p3), 130048  }
   0x9   : > { %457 = vset.pattern.permute.xlu0 (!%p156_p3), %v485_v3  ;;  %458 = vset.pattern.permute.xlu1 (!%p156_p3), %v485_v3 }
   0xa   : > { %208 = vperm.xlu0 (!%p156_p3), %457, %v203_v1   ;;  %218 = vperm.xlu1 (!%p156_p3), %458, %v205_v2  }
   0xe   : > { %s573_s12 = smov (!%p184_p4, %s473_s12), 1  ;;  %213 = vperm.xlu0 %457, %v204_v7  }
   0xf   : > { %s404_s20 = sshll.u32 %s573_s12, 2  ;;  %s429_s5 = smul.u32 24, %s573_s12 }
  0x10   : > { %s190_s23 = scalar_lea.vmem %s564_s0, %s404_s20 }
  0x11   : > { %v202_v6 = vld [vmem:[%s190_s23] sm:$0xf]  ;;  %s198_s8 = scalar_lea.vmem %s567_s3, %s429_s5 }
  0x12   : > { %417 = vmatpush3.msk.msra.mxu0 %vm231_vm1, %v202_v6  ;;  %428 = vmatpush3.msk.msra.mxu1 %vm231_vm1, %v202_v6 }
  0x13   : > { %419 = vmatmul.mubr.msk.f32.vlgmr.msra.gmra.mrb[0].mxu0 %vm221_vm2, %v199_v4  ;;  %422 = vmatmul.mubr.msk.f32.vlgmr.msra.gmra.mrb[0].mxu1 %vm221_vm2, %v200_v5 }
  0x14   : > { %424 = vmatprep.mubr.msk.f32.mxu1 %vm484_vm0, %v483_v0 }
  0x17   : > { %425 = vmatmul.mubr.msk.f32.gmra.mrb[2].mxu1 %vm221_vm2, %v201_v8 }
  0x89   : > { %v209_v9 = vpop.permute.xlu0 %208  ;;  %v219_v17 = vpop.permute.xlu1 %218 }
  0x8d   : > { %v214_v10 = vpop.permute.xlu0 %213 }
  0xe6   : > { %v301_v11 = vpop.f32.mrb[0].mxu0  ;;  %v306_v12 = vpop.f32.mrb[0].mxu1 }
  0xe7   : > { %v302_v13 = vadd.f32 %v301_v11, %v209_v9  ;;  %v307_v14 = vadd.f32 %v306_v12, %v214_v10  ;;  %v423_v15 = vpop.f32.mrb[1].mxu1  ;;  %v420_v16 = vpop.f32.mrb[1].mxu0 }
  0xe9   : > { %316 = vst.msk [vmem:[%s198_s8] sm:$0xff] %vm315_vm3, %v302_v13  ;;  %317 = vst.msk [vmem:[%s198_s8 + $0x8] sm:$0xff] %vm315_vm3, %v307_v14 }
  0xea   : > { %v311_v18 = vpop.f32.mrb[2].mxu1 }
  0xeb   : > { %v312_v19 = vadd.f32 %v311_v18, %v219_v17  ;;  %v426_v20 = vpop.f32.mrb[3].mxu1 }
  0xed   : > { %318 = vst.msk [vmem:[%s198_s8 + $0x10] sm:$0xff] %vm315_vm3, %v312_v19 }
  0xee PF: > { %s13_s14 = sadd.s32 1, %s481_s14   ;;  %s568_s12 = smov %s477_s13 }
  0xef   : > { %p10_p5 = scmp.ge.s32.totalorder %s13_s14, 4   ;;  %s569_s13 = smov %s571_s15 }
  0xf1   :  { %12 = sbr.rel (!%p10_p5) target bundleno = 2 (0x2), region = 62 }

</bundles_post_ra>
